<compile_context>
chip_gen: v6e
topology: v6e:2x2x1
jax: 0.10.0
libtpu: 0.0.40
codegen_flags: <defaults>
</compile_context>

<pallas_src>
import functools
import math

import jax
import jax.numpy as jnp
import numpy as np
from jax.experimental import pallas as pl
from jax.experimental.pallas import tpu as pltpu


def _round_up(x, m):
    return -(-x // m) * m


def attention_kernel(q_ref, r_ref, wrb_ref, wqb_ref, brr_ref, bqr_ref, vb_ref,
                     refout_ref, logits_ref, *, use_tanh, C):
    # Per-step shapes (F = H*S):
    #   q_ref      (block_b, H)   query rows
    #   r_ref      (block_b, F)   ref rows, feature index = s*H + i  (ref's own layout)
    #   wrb_ref    (F, F)         block-diag W_ref; output feature index = h*S + s
    #   wqb_ref    (H, F)         W_query columns replicated across s
    #   brr_ref    (1, F)         conv bias in (h, s) order
    #   bqr_ref    (1, F)         linear bias in (h, s) order
    #   vb_ref     (F, S)         V selection matrix: VB[h*S+s, t] = V[h]*delta(s,t)
    #   refout_ref (block_b, F)   ref_proj, (h, s) order -> reshape to (B, H, S) is free
    #   logits_ref (block_b, S)
    r = r_ref[...]
    q = q_ref[...]

    # ref_proj[b, h*S+s] = sum_i ref[b, s, i] * wr[h, i] + br[h]
    rp = jnp.dot(r, wrb_ref[...], preferred_element_type=jnp.float32) + brr_ref[...]
    # qp[b, h*S+s] = sum_i q[b, i] * wq[h, i] + bq[h]   (broadcast over s by construction)
    qp = jnp.dot(q, wqb_ref[...], preferred_element_type=jnp.float32) + bqr_ref[...]

    u = jnp.tanh(rp + qp)                                           # (block_b, F)
    # logits[b, s] = sum_h V[h] * u[b, h*S+s]
    logits = jnp.dot(u, vb_ref[...], preferred_element_type=jnp.float32)  # (block_b, S)
    if use_tanh:
        logits = C * jnp.tanh(logits)

    refout_ref[...] = rp.astype(refout_ref.dtype)
    logits_ref[...] = logits.astype(logits_ref.dtype)


def attention_forward(query, ref, wq, bq, wr, br, v, use_tanh=False, C=10.0,
                      block_b=None):
    """Pallas attention.forward: query (B, H), ref (B, S, H) -> ((B, H, S), (B, S))."""
    B, H = query.shape
    _, S, _ = ref.shape
    F = S * H
    lane = 128

    # Per batch row, double-buffered f32 VMEM bytes:
    #   ref tile (F lanes, dense) + query tile (H -> padded to 128 lanes)
    # + ref_proj tile (F lanes)   + logits tile (S -> padded to 128 lanes).
    per_row = 4 * 2 * (F + _round_up(H, lane) + F + _round_up(S, lane))

    if block_b is None:
        if B <= 8:
            block_b = B                       # one exact block (block dim == array dim)
        else:
            # Largest block that fits a ~24 MiB working set (safe on v7x's 64 MiB
            # physical VMEM), while keeping n_blk >= 2 so both v7x TCs get work.
            cap_vmem = max(8, ((24 * 1024 * 1024) // per_row) // 8 * 8)
            cap_tc = max(8, _round_up(-(-B // 2), 8))
            block_b = max(8, min(2048, cap_vmem, cap_tc))

    n_blk = -(-B // block_b)

    # ---- constant matrices (tiny, built once per call; exact 0/1 / copy structure) ----
    eye_s = jnp.eye(S, dtype=jnp.float32)
    # WR_big[s*H + i, h*S + t] = wr[h, i] * delta(s, t)
    wr_big = (wr.T[None, :, :, None] * eye_s[:, None, None, :]).reshape(F, F)
    # WQ_big[i, h*S + t] = wq[h, i]
    wq_big = jnp.broadcast_to(wq.T[:, :, None], (H, H, S)).reshape(H, F)
    br_row = jnp.broadcast_to(br[:, None], (H, S)).reshape(1, F)
    bq_row = jnp.broadcast_to(bq[:, None], (H, S)).reshape(1, F)
    # VB[h*S + s, t] = v[h] * delta(s, t)
    v_blk = (v[:, None, None] * eye_s[None, :, :]).reshape(F, S)

    r2d = ref.reshape(B, F)                   # free view: row feature index = s*H + i

    # Explicit VMEM limit (default scoped limit is only 16 MiB on v5e / 32 MiB v6e-v7x).
    const_bytes = 4 * 2 * (F * F + H * F + F * _round_up(S, lane) + 2 * F)
    est = block_b * per_row + const_bytes
    vmem_limit = int(min(56 * 1024 * 1024, max(32 * 1024 * 1024, 2 * est)))

    kernel = functools.partial(attention_kernel, use_tanh=use_tanh, C=C)

    refp_flat, logits = pl.pallas_call(
        kernel,
        out_shape=(jax.ShapeDtypeStruct((B, F), jnp.float32),
                   jax.ShapeDtypeStruct((B, S), jnp.float32)),
        grid=(n_blk,),
        in_specs=[
            pl.BlockSpec((block_b, H), lambda i: (i, 0)),   # query rows
            pl.BlockSpec((block_b, F), lambda i: (i, 0)),   # ref rows (lane-dense)
            pl.BlockSpec((F, F), lambda i: (0, 0)),         # WR_big   (resident)
            pl.BlockSpec((H, F), lambda i: (0, 0)),         # WQ_big   (resident)
            pl.BlockSpec((1, F), lambda i: (0, 0)),         # br row   (resident)
            pl.BlockSpec((1, F), lambda i: (0, 0)),         # bq row   (resident)
            pl.BlockSpec((F, S), lambda i: (0, 0)),         # V block  (resident)
        ],
        out_specs=(
            pl.BlockSpec((block_b, F), lambda i: (i, 0)),   # ref_proj, lane-dense
            pl.BlockSpec((block_b, S), lambda i: (i, 0)),   # logits
        ),
        compiler_params=pltpu.CompilerParams(
            dimension_semantics=("parallel",),
            vmem_limit_bytes=vmem_limit),
    )(query, r2d, wr_big, wq_big, br_row, bq_row, v_blk)

    # Pure reshape back to the module's (B, H, S) convention — no transpose, no copy.
    ref_proj = refp_flat.reshape(B, H, S)
    return ref_proj, logits


def attention_reference(query, ref, wq, bq, wr, br, v, use_tanh=False, C=10.0):
    """Pure-JAX reference mirroring the PyTorch forward."""
    qp = query @ wq.T + bq                                        # (B, H)
    rp = jnp.einsum('oh,bsh->bos', wr, ref) + br[None, :, None]   # (B, H, S)
    u = jnp.tanh(qp[:, :, None] + rp)                             # (B, H, S)
    logits = jnp.einsum('h,bhs->bs', v, u)                        # (B, S)
    if use_tanh:
        logits = C * jnp.tanh(logits)
    return rp, logits


if __name__ == "__main__":
    S, H = 8, 32
    key = jax.random.PRNGKey(0)
    k_q, k_r, k_wq, k_bq, k_wr, k_br, k_v = jax.random.split(key, 7)

    bound = 1.0 / math.sqrt(H)
    wq = jax.random.uniform(k_wq, (H, H), jnp.float32, -bound, bound)
    bq = jax.random.uniform(k_bq, (H,), jnp.float32, -bound, bound)
    wr = jax.random.uniform(k_wr, (H, H), jnp.float32, -bound, bound)
    br = jax.random.uniform(k_br, (H,), jnp.float32, -bound, bound)
    v = jax.random.uniform(k_v, (H,), jnp.float32, -bound, bound)

    # (B=2: single exact block)  (B=20: multi-block grid with a ragged last block)
    for B in (2, 20):
        kq, kr = jax.random.split(jax.random.fold_in(key, B))
        query = jax.random.normal(kq, (B, H), dtype=jnp.float32)
        ref = jax.random.normal(kr, (B, S, H), dtype=jnp.float32)
        for ut in (False, True):
            rp_k, lg_k = attention_forward(query, ref, wq, bq, wr, br, v,
                                           use_tanh=ut)
            jax.block_until_ready((rp_k, lg_k))
            rp_r, lg_r = attention_reference(query, ref, wq, bq, wr, br, v,
                                             use_tanh=ut)
            np.testing.assert_allclose(np.asarray(rp_k), np.asarray(rp_r),
                                       rtol=1e-5, atol=1e-5)
            np.testing.assert_allclose(np.asarray(lg_k), np.asarray(lg_r),
                                       rtol=1e-5, atol=1e-5)

    print("KERNEL_OK")
</pallas_src>

<mosaic_0001>
module attributes {stable_mosaic.version = 11 : i64} {
  func.func @attention_kernel(%arg0: i32, %arg1: memref<2x32xf32, #tpu.memory_space<vmem>>, %arg2: memref<2x256xf32, #tpu.memory_space<vmem>>, %arg3: memref<256x256xf32, #tpu.memory_space<vmem>>, %arg4: memref<32x256xf32, #tpu.memory_space<vmem>>, %arg5: memref<1x256xf32, #tpu.memory_space<vmem>>, %arg6: memref<1x256xf32, #tpu.memory_space<vmem>>, %arg7: memref<256x8xf32, #tpu.memory_space<vmem>>, %arg8: memref<2x256xf32, #tpu.memory_space<vmem>>, %arg9: memref<2x8xf32, #tpu.memory_space<vmem>>) attributes {dimension_semantics = [#tpu.dimension_semantics<parallel>], iteration_bounds = array<i64: 1>, scalar_prefetch = 0 : i64, scratch_operands = 0 : i64, tpu.core_type = #tpu.core_type<tc>, window_params = [{transform_indices = @transform_0, window_bounds = array<i64: 2, 32>}, {transform_indices = @transform_1, window_bounds = array<i64: 2, 256>}, {pipeline_mode = #tpu.pipeline_mode<synchronous>, transform_indices = @transform_2, window_bounds = array<i64: 256, 256>}, {pipeline_mode = #tpu.pipeline_mode<synchronous>, transform_indices = @transform_3, window_bounds = array<i64: 32, 256>}, {pipeline_mode = #tpu.pipeline_mode<synchronous>, transform_indices = @transform_4, window_bounds = array<i64: 1, 256>}, {pipeline_mode = #tpu.pipeline_mode<synchronous>, transform_indices = @transform_5, window_bounds = array<i64: 1, 256>}, {pipeline_mode = #tpu.pipeline_mode<synchronous>, transform_indices = @transform_6, window_bounds = array<i64: 256, 8>}, {transform_indices = @transform_7, window_bounds = array<i64: 2, 256>}, {transform_indices = @transform_8, window_bounds = array<i64: 2, 8>}]} {
    %c0 = arith.constant 0 : index
    %c0_0 = arith.constant 0 : index
    %0 = vector.load %arg2[%c0, %c0_0] : memref<2x256xf32, #tpu.memory_space<vmem>>, vector<2x256xf32>
    %c0_1 = arith.constant 0 : index
    %c0_2 = arith.constant 0 : index
    %1 = vector.load %arg1[%c0_1, %c0_2] : memref<2x32xf32, #tpu.memory_space<vmem>>, vector<2x32xf32>
    %c0_3 = arith.constant 0 : index
    %c0_4 = arith.constant 0 : index
    %2 = vector.load %arg3[%c0_3, %c0_4] : memref<256x256xf32, #tpu.memory_space<vmem>>, vector<256x256xf32>
    %cst = arith.constant dense<0.000000e+00> : vector<2x256xf32>
    %3 = tpu.matmul %0, %2, %cst {dimension_numbers = #tpu.dot_dimension_numbers<[1], [0], [0], [1], [0, 0, 1, 1], [], []>} : vector<2x256xf32>, vector<256x256xf32>, vector<2x256xf32> -> vector<2x256xf32>
    %c0_5 = arith.constant 0 : index
    %c0_6 = arith.constant 0 : index
    %4 = vector.load %arg5[%c0_5, %c0_6] : memref<1x256xf32, #tpu.memory_space<vmem>>, vector<1x256xf32>
    %5 = vector.broadcast %4 : vector<1x256xf32> to vector<2x256xf32>
    %6 = arith.addf %3, %5 : vector<2x256xf32>
    %c0_7 = arith.constant 0 : index
    %c0_8 = arith.constant 0 : index
    %7 = vector.load %arg4[%c0_7, %c0_8] : memref<32x256xf32, #tpu.memory_space<vmem>>, vector<32x256xf32>
    %cst_9 = arith.constant dense<0.000000e+00> : vector<2x256xf32>
    %8 = tpu.matmul %1, %7, %cst_9 {dimension_numbers = #tpu.dot_dimension_numbers<[1], [0], [0], [1], [0, 0, 1, 1], [], []>} : vector<2x32xf32>, vector<32x256xf32>, vector<2x256xf32> -> vector<2x256xf32>
    %c0_10 = arith.constant 0 : index
    %c0_11 = arith.constant 0 : index
    %9 = vector.load %arg6[%c0_10, %c0_11] : memref<1x256xf32, #tpu.memory_space<vmem>>, vector<1x256xf32>
    %10 = vector.broadcast %9 : vector<1x256xf32> to vector<2x256xf32>
    %11 = arith.addf %8, %10 : vector<2x256xf32>
    %12 = arith.addf %6, %11 : vector<2x256xf32>
    %13 = math.tanh %12 : vector<2x256xf32>
    %c0_12 = arith.constant 0 : index
    %c0_13 = arith.constant 0 : index
    %14 = vector.load %arg7[%c0_12, %c0_13] : memref<256x8xf32, #tpu.memory_space<vmem>>, vector<256x8xf32>
    %cst_14 = arith.constant dense<0.000000e+00> : vector<2x8xf32>
    %15 = tpu.matmul %13, %14, %cst_14 {dimension_numbers = #tpu.dot_dimension_numbers<[1], [0], [0], [1], [0, 0, 1, 1], [], []>} : vector<2x256xf32>, vector<256x8xf32>, vector<2x8xf32> -> vector<2x8xf32>
    %c0_15 = arith.constant 0 : index
    %c0_16 = arith.constant 0 : index
    %16 = vector.load %arg8[%c0_15, %c0_16] : memref<2x256xf32, #tpu.memory_space<vmem>>, vector<2x256xf32>
    tpu.vector_store %arg8[%c0_15, %c0_16], %6 {strides = array<i32>} : memref<2x256xf32, #tpu.memory_space<vmem>>, vector<2x256xf32>,
    %c0_17 = arith.constant 0 : index
    %c0_18 = arith.constant 0 : index
    %17 = vector.load %arg9[%c0_17, %c0_18] : memref<2x8xf32, #tpu.memory_space<vmem>>, vector<2x8xf32>
    tpu.vector_store %arg9[%c0_17, %c0_18], %15 {strides = array<i32>} : memref<2x8xf32, #tpu.memory_space<vmem>>, vector<2x8xf32>,
    return
  }
  func.func @transform_0(%arg0: i32) -> (i32, i32) {
    %c0_i32 = arith.constant 0 : i32
    %c0_i32_0 = arith.constant 0 : i32
    return %arg0, %c0_i32 : i32, i32
  }
  func.func @transform_1(%arg0: i32) -> (i32, i32) {
    %c0_i32 = arith.constant 0 : i32
    %c0_i32_0 = arith.constant 0 : i32
    return %arg0, %c0_i32 : i32, i32
  }
  func.func @transform_2(%arg0: i32) -> (i32, i32) {
    %c0_i32 = arith.constant 0 : i32
    %c0_i32_0 = arith.constant 0 : i32
    %c0_i32_1 = arith.constant 0 : i32
    return %c0_i32, %c0_i32_0 : i32, i32
  }
  func.func @transform_3(%arg0: i32) -> (i32, i32) {
    %c0_i32 = arith.constant 0 : i32
    %c0_i32_0 = arith.constant 0 : i32
    %c0_i32_1 = arith.constant 0 : i32
    return %c0_i32, %c0_i32_0 : i32, i32
  }
  func.func @transform_4(%arg0: i32) -> (i32, i32) {
    %c0_i32 = arith.constant 0 : i32
    %c0_i32_0 = arith.constant 0 : i32
    %c0_i32_1 = arith.constant 0 : i32
    return %c0_i32, %c0_i32_0 : i32, i32
  }
  func.func @transform_5(%arg0: i32) -> (i32, i32) {
    %c0_i32 = arith.constant 0 : i32
    %c0_i32_0 = arith.constant 0 : i32
    %c0_i32_1 = arith.constant 0 : i32
    return %c0_i32, %c0_i32_0 : i32, i32
  }
  func.func @transform_6(%arg0: i32) -> (i32, i32) {
    %c0_i32 = arith.constant 0 : i32
    %c0_i32_0 = arith.constant 0 : i32
    %c0_i32_1 = arith.constant 0 : i32
    return %c0_i32, %c0_i32_0 : i32, i32
  }
  func.func @transform_7(%arg0: i32) -> (i32, i32) {
    %c0_i32 = arith.constant 0 : i32
    %c0_i32_0 = arith.constant 0 : i32
    return %arg0, %c0_i32 : i32, i32
  }
  func.func @transform_8(%arg0: i32) -> (i32, i32) {
    %c0_i32 = arith.constant 0 : i32
    %c0_i32_0 = arith.constant 0 : i32
    return %arg0, %c0_i32 : i32, i32
  }
}

</mosaic_0001>

<bundles_post_ra>
// kernel: tpu_custom_call.1
= control target key start
LH: loop header
LB: loop body
LE: loop exit
PB: predicated region body
PF: predicated region fallthrough
CT: control target
= control target key end

     0   :  { %14 = vsyncpa [#allocation3], 0  ;;  %s759_s0 = inlined_call_operand.vmem [shape: f32[2,32], index: 0, kind: input, shape index: {}]   ;;  %s760_s1 = inlined_call_operand.vmem [shape: f32[2,256], index: 1, kind: input, shape index: {}]   ;;  %s761_s2 = inlined_call_operand.hbm [shape: f32[256,256], index: 2, kind: input, shape index: {}]   ;;  %s762_s3 = inlined_call_operand.vmem [shape: f32[32,256], index: 3, kind: input, shape index: {}]   ;;  %s763_s4 = inlined_call_operand.vmem [shape: f32[1,256], index: 4, kind: input, shape index: {}]   ;;  %s764_s5 = inlined_call_operand.vmem [shape: f32[1,256], index: 5, kind: input, shape index: {}]   ;;  %s765_s6 = inlined_call_operand.vmem [shape: f32[256,8], index: 6, kind: input, shape index: {}]   ;;  %s766_s7 = inlined_call_operand.hbm [shape: f32[2,256], index: 7, kind: output, shape index: {0}]   ;;  %s767_s8 = inlined_call_operand.hbm [shape: f32[2,8], index: 8, kind: output, shape index: {1}]  }
   0x1   :  { %15 = vsyncpa [#allocation4], 0 }
   0x2   :  { %16 = vsyncpa [#allocation7], 0  ;;  %s562_s27 = smov [#allocation2]  }
   0x3   :  { %s26_s28 = sshll.u32 %s562_s27, 4  ;;  %s27_s28 = int_to_ptr.vmem [resolvable:$true] %s26_s28 }
   0x4   :  { %s504_s29 = scalar_lea.vmem %s27_s28, 8192  ;;  %p509_p1 = scmp.lt.s32.totalorder %s27_s28, %s27_s28 }
   0x5   :  { %p505_p0 = scmp.ne.s32.totalorder %s27_s28, %s504_s29  ;;  %p510_p2 = scmp.lt.s32.totalorder %s504_s29, %s504_s29 }
   0x7   :  { %p511_p3 = por %p510_p2, %p509_p1 }
   0x9   :  { %p512_p4 = pnand %p511_p3, %p505_p0 }
   0xb   :  { %515 = shalt.err (!%p512_p4)
}
   0xc   :  { %s563_s30 = smov 256   ;;  %s564_s9 = smov 16  }
   0xd   :  { %32 = dma.hbm_to_vmem [thread:$0]  %s761_s2, 8192, %s27_s28, [#allocation3], %s563_s30, %s563_s30, %s564_s9  }
   0xe   :  { %556 = dma.done.wait [#allocation3], 8192  }
   0xf   :  { %557 = vsyncadd [#allocation3], 4294959104  ;;  %v565_v0 = vmov 0.0   ;;  %v77_v1 = vld [vmem:[#allocation2 + $0xf8] sm:$0xff]  ;;  %v76_v2 = vld [vmem:[#allocation2 + $0xf0] sm:$0xff]  ;;  %vm224_vm0 = vcmask 261120  }
  0x10   :  { %292 = vmatprep.mubr.f32.mxu1 %v565_v0  ;;  %v75_v3 = vld [vmem:[#allocation2 + $0xe8] sm:$0xff]  ;;  %133 = vmatprep.subr.mxu0 %v77_v1  ;;  %v74_v4 = vld [vmem:[#allocation2 + $0xe0] sm:$0xff]  ;;  %v73_v5 = vld [vmem:[#allocation2 + $0xd8] sm:$0xff] }
  0x11   :  { %134 = vmatpush1.msra.mxu0 %v76_v2  ;;  %v72_v6 = vld [vmem:[#allocation2 + $0xd0] sm:$0xff]  ;;  %v71_v7 = vld [vmem:[#allocation2 + $0xc8] sm:$0xff]  ;;  %v70_v8 = vld [vmem:[#allocation2 + $0xc0] sm:$0xff] }
  0x12   :  { %135 = vmatprep.subr.mxu0 %v75_v3  ;;  %v69_v9 = vld [vmem:[#allocation2 + $0xb8] sm:$0xff]  ;;  %v68_v10 = vld [vmem:[#allocation2 + $0xb0] sm:$0xff]  ;;  %v67_v11 = vld [vmem:[#allocation2 + $0xa8] sm:$0xff] }
  0x13   :  { %136 = vmatpush1.msra.mxu0 %v74_v4  ;;  %v66_v12 = vld [vmem:[#allocation2 + $0xa0] sm:$0xff]  ;;  %v65_v13 = vld [vmem:[#allocation2 + $0x98] sm:$0xff]  ;;  %v64_v14 = vld [vmem:[#allocation2 + $0x90] sm:$0xff] }
  0x14   :  { %137 = vmatprep.subr.mxu0 %v73_v5  ;;  %v63_v15 = vld [vmem:[#allocation2 + $0x88] sm:$0xff]  ;;  %v62_v16 = vld [vmem:[#allocation2 + $0x80] sm:$0xff]  ;;  %v61_v17 = vld [vmem:[#allocation2 + $0x78] sm:$0xff] }
  0x15   :  { %138 = vmatpush1.msra.mxu0 %v72_v6  ;;  %v60_v18 = vld [vmem:[#allocation2 + $0x70] sm:$0xff]  ;;  %v59_v19 = vld [vmem:[#allocation2 + $0x68] sm:$0xff]  ;;  %v58_v20 = vld [vmem:[#allocation2 + $0x60] sm:$0xff] }
  0x16   :  { %139 = vmatprep.subr.mxu0 %v71_v7  ;;  %v57_v21 = vld [vmem:[#allocation2 + $0x58] sm:$0xff]  ;;  %v56_v23 = vld [vmem:[#allocation2 + $0x50] sm:$0xff]  ;;  %v209_v25 = vld [vmem:[%s762_s3 + $0x28] sm:$0xff] }
  0x17   :  { %140 = vmatpush1.msra.mxu0 %v70_v8  ;;  %v211_v22 = vld [vmem:[%s762_s3 + $0x38] sm:$0xff]  ;;  %v210_v24 = vld [vmem:[%s762_s3 + $0x30] sm:$0xff]  ;;  %v55_v26 = vld [vmem:[#allocation2 + $0x48] sm:$0xff] }
  0x18   :  { %141 = vmatprep.subr.mxu0 %v69_v9  ;;  %252 = vmatprep.subr.mxu1 %v211_v22  ;;  %v208_v27 = vld [vmem:[%s762_s3 + $0x20] sm:$0xff]  ;;  %v207_v29 = vld [vmem:[%s762_s3 + $0x18] sm:$0xff]  ;;  %v206_v30 = vld [vmem:[%s762_s3 + $0x10] sm:$0xff] }
  0x19   :  { %142 = vmatpush1.msra.mxu0 %v68_v10  ;;  %253 = vmatpush1.msra.mxu1 %v210_v24  ;;  %v54_v28 = vld [vmem:[#allocation2 + $0x40] sm:$0xff]  ;;  %v53_v31 = vld [vmem:[#allocation2 + $0x38] sm:$0xff]  ;;  %v205_v32 = vld [vmem:[%s762_s3 + $0x8] sm:$0xff] }
  0x1a   :  { %143 = vmatprep.subr.mxu0 %v67_v11  ;;  %254 = vmatprep.subr.mxu1 %v209_v25  ;;  %v52_v33 = vld [vmem:[#allocation2 + $0x30] sm:$0xff]  ;;  %v51_v34 = vld [vmem:[#allocation2 + $0x28] sm:$0xff]  ;;  %v204_v35 = vld [vmem:[%s762_s3] sm:$0xff] }
  0x1b   :  { %144 = vmatpush1.msra.mxu0 %v66_v12  ;;  %255 = vmatpush1.msra.mxu1 %v208_v27  ;;  %v45_v36 = vld [vmem:[%s759_s0] sm:$0x3]  ;;  %v49_v40 = vld [vmem:[#allocation2 + $0x18] sm:$0xff]  ;;  %v48_v42 = vld [vmem:[#allocation2 + $0x10] sm:$0xff] }
  0x1c   :  { %145 = vmatprep.subr.mxu0 %v65_v13  ;;  %256 = vmatprep.subr.mxu1 %v207_v29  ;;  %v646_v37 = vld.sshfl [vmem:[%s760_s1] sm:$0x33 pattern:$0x76325410]  ;;  %v334_v41 = vld [vmem:[%s765_s6 + $0xf8] sm:$0xff]  ;;  %v47_v44 = vld [vmem:[#allocation2 + $0x8] sm:$0xff] }
  0x1d   :  { %146 = vmatpush1.msra.mxu0 %v64_v14  ;;  %257 = vmatpush1.msra.mxu1 %v206_v30  ;;  %v50_v38 = vld [vmem:[#allocation2 + $0x20] sm:$0xff]  ;;  %v130_v39 = vcombine.high %v646_v37, %v646_v37  ;;  %v318_v43 = vld [vmem:[%s765_s6 + $0x78] sm:$0xff]  ;;  %v333_v45 = vld [vmem:[%s765_s6 + $0xf0] sm:$0xff] }
  0x1e   :  { %147 = vmatprep.subr.mxu0 %v63_v15  ;;  %258 = vmatprep.subr.mxu1 %v205_v32  ;;  %v46_v46 = vld [vmem:[#allocation2] sm:$0xff]  ;;  %v317_v47 = vld [vmem:[%s765_s6 + $0x70] sm:$0xff]  ;;  %v109_v48 = vld [vmem:[#allocation2 + $0x1f8] sm:$0xff] }
  0x1f   :  { %148 = vmatpush1.msra.mxu0 %v62_v16  ;;  %259 = vmatpush1.msra.mxu1 %v204_v35  ;;  %v332_v49 = vld [vmem:[%s765_s6 + $0xe8] sm:$0xff]  ;;  %v108_v50 = vld [vmem:[#allocation2 + $0x1f0] sm:$0xff]  ;;  %v331_v53 = vld [vmem:[%s765_s6 + $0xe0] sm:$0xff] }
  0x20   :  { %149 = vmatprep.subr.mxu0 %v61_v17  ;;  %449 = vmatmul.mubr.msk.f32.vlgmr.msra.gmra.mxu1 %vm224_vm0, %v45_v36  ;;  %v316_v51 = vld [vmem:[%s765_s6 + $0x68] sm:$0xff]  ;;  %v106_v54 = vld [vmem:[#allocation2 + $0x1e0] sm:$0xff]  ;;  %v105_v56 = vld [vmem:[#allocation2 + $0x1d8] sm:$0xff] }
  0x21   :  { %150 = vmatpush1.msra.mxu0 %v60_v18  ;;  %197 = vmatprep.mubr.f32.mxu0 %v130_v39  ;;  %v107_v52 = vld [vmem:[#allocation2 + $0x1e8] sm:$0xff]  ;;  %v315_v55 = vld [vmem:[%s765_s6 + $0x60] sm:$0xff]  ;;  %v104_v57 = vld [vmem:[#allocation2 + $0x1d0] sm:$0xff] }
  0x22   :  { %151 = vmatprep.subr.mxu0 %v59_v19  ;;  %451 = vmatprep.subr.mxu1 %v334_v41  ;;  %v103_v58 = vld [vmem:[#allocation2 + $0x1c8] sm:$0xff]  ;;  %v102_v59 = vld [vmem:[#allocation2 + $0x1c0] sm:$0xff]  ;;  %v101_v60 = vld [vmem:[#allocation2 + $0x1b8] sm:$0xff] }
  0x23   :  { %152 = vmatpush1.msra.mxu0 %v58_v20  ;;  %452 = vmatpush3.msra.mxu1 %v318_v43  ;;  %v100_v61 = vld [vmem:[#allocation2 + $0x1b0] sm:$0xff]  ;;  %v99_v62 = vld [vmem:[#allocation2 + $0x1a8] sm:$0xff]  ;;  %v98_v63 = vld [vmem:[#allocation2 + $0x1a0] sm:$0xff] }
  0x24   :  { %153 = vmatprep.subr.mxu0 %v57_v21  ;;  %453 = vmatprep.subr.mxu1 %v333_v45  ;;  %v97_v0 = vld [vmem:[#allocation2 + $0x198] sm:$0xff]  ;;  %v96_v1 = vld [vmem:[#allocation2 + $0x190] sm:$0xff]  ;;  %v95_v2 = vld [vmem:[#allocation2 + $0x188] sm:$0xff] }
  0x25   :  { %154 = vmatpush1.msra.mxu0 %v56_v23  ;;  %454 = vmatpush3.msra.mxu1 %v317_v47  ;;  %v94_v3 = vld [vmem:[#allocation2 + $0x180] sm:$0xff]  ;;  %v93_v4 = vld [vmem:[#allocation2 + $0x178] sm:$0xff]  ;;  %v92_v5 = vld [vmem:[#allocation2 + $0x170] sm:$0xff] }
  0x26   :  { %155 = vmatprep.subr.mxu0 %v55_v26  ;;  %455 = vmatprep.subr.mxu1 %v332_v49  ;;  %v91_v6 = vld [vmem:[#allocation2 + $0x168] sm:$0xff]  ;;  %v90_v7 = vld [vmem:[#allocation2 + $0x160] sm:$0xff]  ;;  %v89_v8 = vld [vmem:[#allocation2 + $0x158] sm:$0xff] }
  0x27   :  { %156 = vmatpush1.msra.mxu0 %v54_v28  ;;  %456 = vmatpush3.msra.mxu1 %v316_v51  ;;  %v88_v9 = vld [vmem:[#allocation2 + $0x150] sm:$0xff]  ;;  %v87_v10 = vld [vmem:[#allocation2 + $0x148] sm:$0xff]  ;;  %v86_v11 = vld [vmem:[#allocation2 + $0x140] sm:$0xff] }
  0x28   :  { %157 = vmatprep.subr.mxu0 %v53_v31  ;;  %457 = vmatprep.subr.mxu1 %v331_v53  ;;  %v85_v12 = vld [vmem:[#allocation2 + $0x138] sm:$0xff]  ;;  %v84_v13 = vld [vmem:[#allocation2 + $0x130] sm:$0xff]  ;;  %v83_v14 = vld [vmem:[#allocation2 + $0x128] sm:$0xff] }
  0x29   :  { %158 = vmatpush1.msra.mxu0 %v52_v33  ;;  %458 = vmatpush3.msra.mxu1 %v315_v55  ;;  %v82_v15 = vld [vmem:[#allocation2 + $0x120] sm:$0xff]  ;;  %v81_v16 = vld [vmem:[#allocation2 + $0x118] sm:$0xff]  ;;  %v80_v17 = vld [vmem:[#allocation2 + $0x110] sm:$0xff] }
  0x2a   :  { %159 = vmatprep.subr.mxu0 %v51_v34  ;;  %v79_v18 = vld [vmem:[#allocation2 + $0x108] sm:$0xff]  ;;  %v78_v19 = vld [vmem:[#allocation2 + $0x100] sm:$0xff]  ;;  %v330_v20 = vld [vmem:[%s765_s6 + $0xd8] sm:$0xff] }
  0x2b   :  { %160 = vmatpush1.msra.mxu0 %v50_v38  ;;  %v314_v21 = vld [vmem:[%s765_s6 + $0x58] sm:$0xff]  ;;  %459 = vmatprep.subr.mxu1 %v330_v20  ;;  %v329_v22 = vld [vmem:[%s765_s6 + $0xd0] sm:$0xff]  ;;  %v328_v24 = vld [vmem:[%s765_s6 + $0xc8] sm:$0xff] }
  0x2c   :  { %161 = vmatprep.subr.mxu0 %v49_v40  ;;  %460 = vmatpush3.msra.mxu1 %v314_v21  ;;  %v313_v23 = vld [vmem:[%s765_s6 + $0x50] sm:$0xff]  ;;  %v312_v25 = vld [vmem:[%s765_s6 + $0x48] sm:$0xff]  ;;  %v327_v26 = vld [vmem:[%s765_s6 + $0xc0] sm:$0xff] }
  0x2d   :  { %162 = vmatpush1.msra.mxu0 %v48_v42  ;;  %461 = vmatprep.subr.mxu1 %v329_v22  ;;  %v311_v27 = vld [vmem:[%s765_s6 + $0x40] sm:$0xff]  ;;  %v326_v28 = vld [vmem:[%s765_s6 + $0xb8] sm:$0xff]  ;;  %v325_v30 = vld [vmem:[%s765_s6 + $0xb0] sm:$0xff] }
  0x2e   :  { %163 = vmatprep.subr.mxu0 %v47_v44  ;;  %462 = vmatpush3.msra.mxu1 %v313_v23  ;;  %v310_v29 = vld [vmem:[%s765_s6 + $0x38] sm:$0xff]  ;;  %v309_v31 = vld [vmem:[%s765_s6 + $0x30] sm:$0xff]  ;;  %v324_v32 = vld [vmem:[%s765_s6 + $0xa8] sm:$0xff]  ;;  %v112_v44 = vlaneseq }
  0x2f   :  { %164 = vmatpush1.msra.mxu0 %v46_v46  ;;  %463 = vmatprep.subr.mxu1 %v328_v24  ;;  %v308_v33 = vld [vmem:[%s765_s6 + $0x28] sm:$0xff]  ;;  %v323_v34 = vld [vmem:[%s765_s6 + $0xa0] sm:$0xff]  ;;  %v322_v36 = vld [vmem:[%s765_s6 + $0x98] sm:$0xff] }
  0x30   :  { %165 = vmatprep.subr.mxu0 %v109_v48  ;;  %464 = vmatpush3.msra.mxu1 %v312_v25  ;;  %v307_v35 = vld [vmem:[%s765_s6 + $0x20] sm:$0xff]  ;;  %v321_v38 = vld [vmem:[%s765_s6 + $0x90] sm:$0xff]  ;;  %v320_v40 = vld [vmem:[%s765_s6 + $0x88] sm:$0xff]  ;;  %v113_v45 = vshrl.u32 %v112_v44, 7 }
  0x31   :  { %166 = vmatpush2.msra.mxu0 %v108_v50  ;;  %465 = vmatprep.subr.mxu1 %v327_v26  ;;  %v305_v39 = vld [vmem:[%s765_s6 + $0x10] sm:$0xff]  ;;  %v304_v41 = vld [vmem:[%s765_s6 + $0x8] sm:$0xff]  ;;  %v319_v42 = vld [vmem:[%s765_s6 + $0x80] sm:$0xff] }
  0x32   :  { %167 = vmatprep.subr.mxu0 %v107_v52  ;;  %466 = vmatpush3.msra.mxu1 %v311_v27  ;;  %v303_v43 = vld [vmem:[%s765_s6] sm:$0xff]  ;;  %v114_v46 = vsub.s32 0, %v113_v45  ;;  %v118_v49 = vsub.s32 1, %v113_v45 }
  0x33   :  { %168 = vmatpush2.msra.mxu0 %v106_v54  ;;  %467 = vmatprep.subr.mxu1 %v326_v28  ;;  %v212_v47 = vld [vmem:[%s764_s5] sm:$0x3] }
  0x34   :  { %169 = vmatprep.subr.mxu0 %v105_v56  ;;  %468 = vmatpush3.msra.mxu1 %v310_v29  ;;  %v110_v48 = vld [vmem:[%s763_s4] sm:$0x3]  ;;  %v217_v50 = vrot.slane %v212_v47, %v114_v46  ;;  %v221_v53 = vrot.slane %v212_v47, %v118_v49  ;;  %s566_s4 = smov [#allocation5]  }
  0x35   :  { %170 = vmatpush2.msra.mxu0 %v104_v57  ;;  %469 = vmatprep.subr.mxu1 %v325_v30  ;;  %v115_v52 = vrot.slane %v110_v48, %v114_v46  ;;  %v119_v54 = vrot.slane %v110_v48, %v118_v49  ;;  %s425_s5 = sshll.u32 %s566_s4, 4  ;;  %s426_s5 = int_to_ptr.vmem [resolvable:$true] %s425_s5 }
  0x36   :  { %171 = vmatprep.subr.mxu0 %v103_v58  ;;  %470 = vmatpush3.msra.mxu1 %v309_v31  ;;  %p521_p6 = scmp.lt.s32.totalorder %s426_s5, %s426_s5 }
  0x37   :  { %172 = vmatpush2.msra.mxu0 %v102_v59  ;;  %471 = vmatprep.subr.mxu1 %v324_v32 }
  0x38   :  { %173 = vmatprep.subr.mxu0 %v101_v60  ;;  %472 = vmatpush3.msra.mxu1 %v308_v33 }
  0x39   :  { %174 = vmatpush2.msra.mxu0 %v100_v61  ;;  %473 = vmatprep.subr.mxu1 %v323_v34 }
  0x3a   :  { %175 = vmatprep.subr.mxu0 %v99_v62  ;;  %474 = vmatpush3.msra.mxu1 %v307_v35 }
  0x3b   :  { %176 = vmatpush2.msra.mxu0 %v98_v63  ;;  %475 = vmatprep.subr.mxu1 %v322_v36 }
  0x3c   :  { %177 = vmatprep.subr.mxu0 %v97_v0 }
  0x3d   :  { %178 = vmatpush2.msra.mxu0 %v96_v1 }
  0x3e   :  { %179 = vmatprep.subr.mxu0 %v95_v2 }
  0x3f   :  { %180 = vmatpush2.msra.mxu0 %v94_v3 }
  0x40   :  { %181 = vmatprep.subr.mxu0 %v93_v4 }
  0x41   :  { %182 = vmatpush2.msra.mxu0 %v92_v5 }
  0x42   :  { %183 = vmatprep.subr.mxu0 %v91_v6 }
  0x43   :  { %184 = vmatpush2.msra.mxu0 %v90_v7 }
  0x44   :  { %185 = vmatprep.subr.mxu0 %v89_v8 }
  0x45   :  { %186 = vmatpush2.msra.mxu0 %v88_v9 }
  0x46   :  { %187 = vmatprep.subr.mxu0 %v87_v10 }
  0x47   :  { %188 = vmatpush2.msra.mxu0 %v86_v11 }
  0x48   :  { %189 = vmatprep.subr.mxu0 %v85_v12 }
  0x49   :  { %190 = vmatpush2.msra.mxu0 %v84_v13 }
  0x4a   :  { %191 = vmatprep.subr.mxu0 %v83_v14 }
  0x4b   :  { %192 = vmatpush2.msra.mxu0 %v82_v15 }
  0x4c   :  { %193 = vmatprep.subr.mxu0 %v81_v16 }
  0x4d   :  { %194 = vmatpush2.msra.mxu0 %v80_v17 }
  0x4e   :  { %195 = vmatprep.subr.mxu0 %v79_v18 }
  0x4f   :  { %196 = vmatpush2.msra.mxu0 %v78_v19 }
  0x50   :  { %198 = vmatmul.mubr.f32.vlgmr.msra.gmra.mxu0 %v646_v37  ;;  %v306_v37 = vld [vmem:[%s765_s6 + $0x18] sm:$0xff]  ;;  %s516_s6 = scalar_lea.vmem %s426_s5, 64 }
  0x51   :  { %476 = vmatpush3.msra.mxu1 %v306_v37  ;;  %p517_p5 = scmp.ne.s32.totalorder %s426_s5, %s516_s6  ;;  %p522_p7 = scmp.lt.s32.totalorder %s516_s6, %s516_s6 }
  0x52   :  { %477 = vmatprep.subr.mxu1 %v321_v38 }
  0x53   :  { %478 = vmatpush3.msra.mxu1 %v305_v39  ;;  %p523_p8 = por %p522_p7, %p521_p6 }
  0x54   :  { %479 = vmatprep.subr.mxu1 %v320_v40 }
  0x55   :  { %480 = vmatpush3.msra.mxu1 %v304_v41  ;;  %p524_p9 = pnand %p523_p8, %p517_p5 }
  0x56   :  { %481 = vmatprep.subr.mxu1 %v319_v42 }
  0x57   :  { %482 = vmatpush3.msra.mxu1 %v303_v43 }
  0xe0   :  { %v294_v51 = vpop.f32.mrf.mxu1 }
  0xe1   :  { %v295_v55 = vadd.f32 %v294_v51, %v217_v50 }
  0xe2   :  { %v296_v57 = vpop.f32.mrf.mxu1 }
  0xe3   :  { %v297_v60 = vadd.f32 %v296_v57, %v221_v53 }
 0x110   :  { %v199_v56 = vpop.f32.mrf.mxu0 }
 0x111   :  { %v200_v58 = vadd.f32 %v199_v56, %v115_v52 }
 0x112   :  { %v201_v59 = vpop.f32.mrf.mxu0 }
 0x113   :  { %v202_v61 = vadd.f32 %v201_v59, %v119_v54  ;;  %v299_v62 = vadd.f32 %v295_v55, %v200_v58 }
 0x115   :  { %v300_v63 = vadd.f32 %v297_v60, %v202_v61  ;;  %v407_v0 = vcombine.low %v200_v58, %v202_v61 }
 0x117   :  { %492 = vtanh.f32 %v300_v63  ;;  %450 = vst.sshfl [vmem:[#allocation5] sm:$0x33 pattern:$0x76325410] %v407_v0 }
 0x118   :  { %494 = vtanh.f32 %v299_v62 }
 0x124   :  { %v493_v1 = vpop.eup %492 }
 0x125   :  { %v495_v2 = vpop.eup %494  ;;  %399 = vmatprep.mubr.f32.mxu1 %v493_v1 }
 0x126   :  { %400 = vmatmul.mubr.f32.vlgmr.msra.gmra.mxu1 %v495_v2 }
 0x127   :  { %527 = shalt.err (!%p524_p9)
}
 0x128   :  { %428 = dma.vmem_to_hbm [thread:$0]  %s426_s5, 64, %s766_s7, [#allocation4]   ;;  %vm417_vm1 = vcmask 58368  }
 0x129   :  { %s567_s23 = smov [#allocation6]  }
 0x12a   :  { %s435_s24 = sshll.u32 %s567_s23, 4  ;;  %s436_s24 = int_to_ptr.vmem [resolvable:$true] %s435_s24 }
 0x12b   :  { %s536_s25 = scalar_lea.vmem %s436_s24, 32  ;;  %p541_p11 = scmp.lt.s32.totalorder %s436_s24, %s436_s24 }
 0x12c   :  { %p537_p10 = scmp.ne.s32.totalorder %s436_s24, %s536_s25  ;;  %p542_p12 = scmp.lt.s32.totalorder %s536_s25, %s536_s25 }
 0x12e   :  { %p543_p13 = por %p542_p12, %p541_p11 }
 0x130   :  { %p544_p0 = pnand %p543_p13, %p537_p10 }
 0x1e6   :  { %v483_v3 = vpop.f32.mrf.mxu1 }
 0x1e8   :  { %v484_v4 = vpop.f32.mrf.mxu1 }
 0x1e9   :  { %v485_v5 = vadd.f32 %v484_v4, %v483_v3 }
 0x1eb   :  { %418 = vst.msk [vmem:[#allocation6] sm:$0x3] %vm417_vm1, %v485_v5 }
 0x1ec   :  { %547 = shalt.err (!%p544_p0)
}
 0x1ed   :  { %438 = dma.vmem_to_hbm [thread:$0]  %s436_s24, 32, %s767_s8, [#allocation7]  }
 0x1ee   :  { %558 = dma.done.wait [#allocation4], 64  }
 0x1ef   :  { %559 = vsyncadd [#allocation4], 4294967232 }
 0x1f0   :  { %560 = dma.done.wait [#allocation7], 32  }
 0x1f1   :  { %561 = vsyncadd [#allocation7], 4294967264 }
 0x1f2   :  { %445 = vsyncpa [#allocation3], 1 }
 0x1f3   :  { %446 = vsyncpa [#allocation4], 1 }
 0x1f4   :  { %447 = vsyncpa [#allocation7], 1 }

</bundles_post_ra>
